<compile_context>
chip_gen: v7x
topology: tpu7x:2x2x1
jax: 0.10.0
libtpu: 0.0.40
codegen_flags: <defaults>
</compile_context>

<pallas_src>
import functools

import jax
import jax.numpy as jnp
from jax import lax
from jax.experimental import pallas as pl
from jax.experimental.pallas import tpu as pltpu

SUB_N = 128  # rows per in-kernel sub-block == lanes per compact output row


def _round_up(x, m):
    return ((x + m - 1) // m) * m


def _nerf_mlp_kernel(x_ref, *refs):
    """Fused NeRF MLP over one row tile.

    x_ref : [tile, d_in_pad]          bf16
    refs  : w0, b0, ..., wH, bH, w_out, b_out, o_ref
      w_i   [d_pad_in, d_pad_out] bf16 (zero padded)   hidden layers (MXU)
      b_i   [1, d_pad_out]        f32
      w_out [8, hid_pad]          f32  (row 0 = final weights^T, rows 1..7 zero)
      b_out [1, 128]              f32  (final bias broadcast across lanes)
    o_ref : [tile // 128, 128]    f32  compact lane-dense densities:
            o[r, c] = density of tile row r*128 + c.
    """
    o_ref = refs[-1]
    wb = refs[:-1]
    n_hidden = (len(wb) - 2) // 2
    w_out_ref, b_out_ref = wb[-2], wb[-1]

    n_sub = x_ref.shape[0] // SUB_N  # static

    def body(s, carry):
        row0 = pl.multiple_of(s * SUB_N, SUB_N)
        h = x_ref[pl.ds(row0, SUB_N), :]                      # [128, d_in_pad] bf16
        for li in range(n_hidden):
            w = wb[2 * li][...]
            b = wb[2 * li + 1][...]
            acc = jnp.dot(h, w, preferred_element_type=jnp.float32) + b
            relu = jnp.maximum(acc, 0.0)
            # Keep the last hidden activation in f32 (it only feeds the small
            # final dot); earlier ones go back to bf16 for the next MXU layer.
            h = relu.astype(jnp.bfloat16) if li < n_hidden - 1 else relu
        # Final 1-wide layer: [8, H] @ [H, 128] -> densities land lane-major in
        # row 0, which is exactly one row of the compact output block.
        dens = jnp.dot(w_out_ref[...], h.T, preferred_element_type=jnp.float32)
        o_ref[pl.ds(s, 1), :] = dens[0:1, :] + b_out_ref[...]
        return carry

    lax.fori_loop(0, n_sub, body, 0)


def prepare_params(params):
    """Pad / cast the (W, b) pairs once into kernel-ready arrays."""
    dims = [params[0][0].shape[0]] + [w.shape[1] for w, _ in params]
    pdims = [_round_up(d, 128) for d in dims]

    flat = []
    for li in range(len(params) - 1):          # hidden (MXU) layers
        w, b = params[li]
        di, do = w.shape
        pdi, pdo = pdims[li], pdims[li + 1]
        wp = jnp.zeros((pdi, pdo), jnp.bfloat16).at[:di, :do].set(
            w.astype(jnp.bfloat16))
        bp = jnp.zeros((1, pdo), jnp.float32).at[:, :do].set(
            b.reshape(1, do).astype(jnp.float32))
        flat += [wp, bp]

    # Final 1-wide layer: transposed into row 0 of an [8, hid_pad] f32 block,
    # plus the scalar bias broadcast across the 128 output lanes.
    w_last, b_last = params[-1]
    hid, d_out = w_last.shape
    assert d_out == 1
    hid_pad = pdims[-2]
    w_out = jnp.zeros((8, hid_pad), jnp.float32).at[0, :hid].set(
        w_last[:, 0].astype(jnp.float32))
    b_out = jnp.zeros((1, SUB_N), jnp.float32) + b_last.astype(jnp.float32).reshape(1, 1)
    flat += [w_out, b_out]
    return tuple(flat)


@functools.partial(jax.jit, static_argnames=("tile_n",))
def nerf_forward(encoded_pos, flat_params, *, tile_n=2048):
    """Run the NeRF density MLP with one fused Pallas kernel.

    encoded_pos: [N, 6*enc_dim] float32
    flat_params: output of prepare_params
    returns:     [N, 1] float32
    """
    n, d_in = encoded_pos.shape
    d_in_pad = flat_params[0].shape[0]
    assert d_in <= d_in_pad
    # Multi-step grids need (tile/128) % 8 == 0 for an (8,128)-aligned out block.
    assert tile_n % (8 * SUB_N) == 0

    n_ceil = _round_up(n, SUB_N)
    tile = n_ceil if n_ceil <= tile_n else tile_n   # single full block for small N
    n_pad = _round_up(n, tile)

    x = jnp.zeros((n_pad, d_in_pad), jnp.bfloat16)
    x = x.at[:n, :d_in].set(encoded_pos.astype(jnp.bfloat16))

    in_specs = [pl.BlockSpec((tile, d_in_pad), lambda i: (i, 0))]
    for p in flat_params:
        # Small grid-constant blocks: full-array specs, resident in VMEM.
        in_specs.append(pl.BlockSpec(p.shape, lambda i: (0, 0)))

    out_rows = n_pad // SUB_N
    out_specs = pl.BlockSpec((tile // SUB_N, SUB_N), lambda i: (i, 0))

    out_compact = pl.pallas_call(
        _nerf_mlp_kernel,
        out_shape=jax.ShapeDtypeStruct((out_rows, SUB_N), jnp.float32),
        grid_spec=pltpu.PrefetchScalarGridSpec(
            num_scalar_prefetch=0,
            grid=(n_pad // tile,),
            in_specs=in_specs,
            out_specs=out_specs,
        ),
        compiler_params=pltpu.CompilerParams(
            dimension_semantics=("parallel",)),
    )(x, *flat_params)

    return out_compact.reshape(n_pad, 1)[:n]


def init_nerf_params(key, enc_dim=10, hid_dim=160, hid_layer_num=2):
    """PyTorch nn.Linear-style init: U(-1/sqrt(fan_in), 1/sqrt(fan_in))."""
    dims = [6 * enc_dim] + [hid_dim] * (hid_layer_num + 1) + [1]
    params = []
    for d_in, d_out in zip(dims[:-1], dims[1:]):
        key, kw, kb = jax.random.split(key, 3)
        bound = 1.0 / jnp.sqrt(d_in)
        w = jax.random.uniform(kw, (d_in, d_out), jnp.float32, -bound, bound)
        b = jax.random.uniform(kb, (1, d_out), jnp.float32, -bound, bound)
        params.append((w, b))
    return params


def nerf_reference(encoded_pos, params):
    """Pure-JAX reference with the same mixed bf16/f32 numerics as the kernel."""
    h = encoded_pos.astype(jnp.float32)
    acc = None
    for i, (w, b) in enumerate(params):
        if i == len(params) - 1:
            acc = jnp.dot(h, w.astype(jnp.float32),
                          preferred_element_type=jnp.float32) + b
        else:
            acc = jnp.dot(h.astype(jnp.bfloat16), w.astype(jnp.bfloat16),
                          preferred_element_type=jnp.float32) + b
            h = jnp.maximum(acc, 0.0)
    return acc


if __name__ == "__main__":
    # TODO(synk): checkpoint_sequential is a training-time recompute trick with
    # no effect on the forward pass, so it has no kernel equivalent here.
    enc_dim, hid_dim, hid_layer_num = 10, 160, 2
    n_points = 1000                    # deliberately not a multiple of the tile
    d_in = 6 * enc_dim                 # 60

    key = jax.random.PRNGKey(0)
    key, kx = jax.random.split(key)
    encoded_pos = jax.random.normal(kx, (n_points, d_in), jnp.float32)

    params = init_nerf_params(key, enc_dim, hid_dim, hid_layer_num)
    flat_params = prepare_params(params)

    density = nerf_forward(encoded_pos, flat_params)
    density = jax.block_until_ready(density)

    ref = nerf_reference(encoded_pos, params)
    assert density.shape == (n_points, 1)
    assert jnp.allclose(density, ref, atol=2e-3, rtol=2e-3), "mismatch vs reference"

    print("KERNEL_OK")
</pallas_src>

<mosaic_0001>
module attributes {stable_mosaic.version = 11 : i64} {
  func.func @_nerf_mlp_kernel(%arg0: i32, %arg1: memref<1024x128xbf16, #tpu.memory_space<vmem>>, %arg2: memref<128x256xbf16, #tpu.memory_space<vmem>>, %arg3: memref<1x256xf32, #tpu.memory_space<vmem>>, %arg4: memref<256x256xbf16, #tpu.memory_space<vmem>>, %arg5: memref<1x256xf32, #tpu.memory_space<vmem>>, %arg6: memref<256x256xbf16, #tpu.memory_space<vmem>>, %arg7: memref<1x256xf32, #tpu.memory_space<vmem>>, %arg8: memref<8x256xf32, #tpu.memory_space<vmem>>, %arg9: memref<1x128xf32, #tpu.memory_space<vmem>>, %arg10: memref<8x128xf32, #tpu.memory_space<vmem>>) attributes {dimension_semantics = [#tpu.dimension_semantics<parallel>], iteration_bounds = array<i64: 1>, scalar_prefetch = 0 : i64, scratch_operands = 0 : i64, tpu.core_type = #tpu.core_type<tc>, window_params = [{transform_indices = @transform_0, window_bounds = array<i64: 1024, 128>}, {pipeline_mode = #tpu.pipeline_mode<synchronous>, transform_indices = @transform_1, window_bounds = array<i64: 128, 256>}, {pipeline_mode = #tpu.pipeline_mode<synchronous>, transform_indices = @transform_2, window_bounds = array<i64: 1, 256>}, {pipeline_mode = #tpu.pipeline_mode<synchronous>, transform_indices = @transform_3, window_bounds = array<i64: 256, 256>}, {pipeline_mode = #tpu.pipeline_mode<synchronous>, transform_indices = @transform_4, window_bounds = array<i64: 1, 256>}, {pipeline_mode = #tpu.pipeline_mode<synchronous>, transform_indices = @transform_5, window_bounds = array<i64: 256, 256>}, {pipeline_mode = #tpu.pipeline_mode<synchronous>, transform_indices = @transform_6, window_bounds = array<i64: 1, 256>}, {pipeline_mode = #tpu.pipeline_mode<synchronous>, transform_indices = @transform_7, window_bounds = array<i64: 8, 256>}, {pipeline_mode = #tpu.pipeline_mode<synchronous>, transform_indices = @transform_8, window_bounds = array<i64: 1, 128>}, {transform_indices = @transform_9, window_bounds = array<i64: 8, 128>}]} {
    %c0_i32 = arith.constant 0 : i32
    %c8_i32 = arith.constant 8 : i32
    %0 = arith.addi %c0_i32, %c8_i32 : i32
    %c1_i32 = arith.constant 1 : i32
    scf.for %arg11 = %c0_i32 to %0 step %c1_i32  : i32 {
      %c128_i32 = arith.constant 128 : i32
      %1 = arith.muli %arg11, %c128_i32 : i32
      %2 = tpu.assume_multiple %1, 128 : i32
      %3 = arith.index_cast %2 : i32 to index
      %c0 = arith.constant 0 : index
      %4 = vector.load %arg1[%3, %c0] : memref<1024x128xbf16, #tpu.memory_space<vmem>>, vector<128x128xbf16>
      %c0_1 = arith.constant 0 : index
      %c0_2 = arith.constant 0 : index
      %5 = vector.load %arg2[%c0_1, %c0_2] : memref<128x256xbf16, #tpu.memory_space<vmem>>, vector<128x256xbf16>
      %c0_3 = arith.constant 0 : index
      %c0_4 = arith.constant 0 : index
      %6 = vector.load %arg3[%c0_3, %c0_4] : memref<1x256xf32, #tpu.memory_space<vmem>>, vector<1x256xf32>
      %cst = arith.constant dense<0.000000e+00> : vector<128x256xf32>
      %7 = tpu.matmul %4, %5, %cst {dimension_numbers = #tpu.dot_dimension_numbers<[1], [0], [0], [1], [0, 0, 1, 1], [], []>} : vector<128x128xbf16>, vector<128x256xbf16>, vector<128x256xf32> -> vector<128x256xf32>
      %8 = vector.broadcast %6 : vector<1x256xf32> to vector<128x256xf32>
      %9 = arith.addf %7, %8 : vector<128x256xf32>
      %cst_5 = arith.constant 0.000000e+00 : f32
      %10 = vector.broadcast %cst_5 : f32 to vector<128x256xf32>
      %11 = arith.maximumf %9, %10 : vector<128x256xf32>
      %12 = arith.truncf %11 : vector<128x256xf32> to vector<128x256xbf16>
      %c0_6 = arith.constant 0 : index
      %c0_7 = arith.constant 0 : index
      %13 = vector.load %arg4[%c0_6, %c0_7] : memref<256x256xbf16, #tpu.memory_space<vmem>>, vector<256x256xbf16>
      %c0_8 = arith.constant 0 : index
      %c0_9 = arith.constant 0 : index
      %14 = vector.load %arg5[%c0_8, %c0_9] : memref<1x256xf32, #tpu.memory_space<vmem>>, vector<1x256xf32>
      %cst_10 = arith.constant dense<0.000000e+00> : vector<128x256xf32>
      %15 = tpu.matmul %12, %13, %cst_10 {dimension_numbers = #tpu.dot_dimension_numbers<[1], [0], [0], [1], [0, 0, 1, 1], [], []>} : vector<128x256xbf16>, vector<256x256xbf16>, vector<128x256xf32> -> vector<128x256xf32>
      %16 = vector.broadcast %14 : vector<1x256xf32> to vector<128x256xf32>
      %17 = arith.addf %15, %16 : vector<128x256xf32>
      %cst_11 = arith.constant 0.000000e+00 : f32
      %18 = vector.broadcast %cst_11 : f32 to vector<128x256xf32>
      %19 = arith.maximumf %17, %18 : vector<128x256xf32>
      %20 = arith.truncf %19 : vector<128x256xf32> to vector<128x256xbf16>
      %c0_12 = arith.constant 0 : index
      %c0_13 = arith.constant 0 : index
      %21 = vector.load %arg6[%c0_12, %c0_13] : memref<256x256xbf16, #tpu.memory_space<vmem>>, vector<256x256xbf16>
      %c0_14 = arith.constant 0 : index
      %c0_15 = arith.constant 0 : index
      %22 = vector.load %arg7[%c0_14, %c0_15] : memref<1x256xf32, #tpu.memory_space<vmem>>, vector<1x256xf32>
      %cst_16 = arith.constant dense<0.000000e+00> : vector<128x256xf32>
      %23 = tpu.matmul %20, %21, %cst_16 {dimension_numbers = #tpu.dot_dimension_numbers<[1], [0], [0], [1], [0, 0, 1, 1], [], []>} : vector<128x256xbf16>, vector<256x256xbf16>, vector<128x256xf32> -> vector<128x256xf32>
      %24 = vector.broadcast %22 : vector<1x256xf32> to vector<128x256xf32>
      %25 = arith.addf %23, %24 : vector<128x256xf32>
      %cst_17 = arith.constant 0.000000e+00 : f32
      %26 = vector.broadcast %cst_17 : f32 to vector<128x256xf32>
      %27 = arith.maximumf %25, %26 : vector<128x256xf32>
      %c0_18 = arith.constant 0 : index
      %c0_19 = arith.constant 0 : index
      %28 = vector.load %arg8[%c0_18, %c0_19] : memref<8x256xf32, #tpu.memory_space<vmem>>, vector<8x256xf32>
      %29 = tpu.transpose %27, [1, 0] : vector<128x256xf32> -> vector<256x128xf32>
      %cst_20 = arith.constant dense<0.000000e+00> : vector<8x128xf32>
      %30 = tpu.matmul %28, %29, %cst_20 {dimension_numbers = #tpu.dot_dimension_numbers<[1], [0], [0], [1], [0, 0, 1, 1], [], []>} : vector<8x256xf32>, vector<256x128xf32>, vector<8x128xf32> -> vector<8x128xf32>
      %31 = vector.extract_strided_slice %30 {offsets = [0, 0], sizes = [1, 128], strides = [1, 1]} : vector<8x128xf32> to vector<1x128xf32>
      %c0_21 = arith.constant 0 : index
      %c0_22 = arith.constant 0 : index
      %32 = vector.load %arg9[%c0_21, %c0_22] : memref<1x128xf32, #tpu.memory_space<vmem>>, vector<1x128xf32>
      %33 = arith.addf %31, %32 : vector<1x128xf32>
      %34 = arith.index_cast %arg11 : i32 to index
      %c0_23 = arith.constant 0 : index
      %35 = vector.load %arg10[%34, %c0_23] : memref<8x128xf32, #tpu.memory_space<vmem>>, vector<1x128xf32>
      tpu.vector_store %arg10[%34, %c0_23], %33 {strides = array<i32>} : memref<8x128xf32, #tpu.memory_space<vmem>>, vector<1x128xf32>,
    }
    %c8_i32_0 = arith.constant 8 : i32
    return
  }
  func.func @transform_0(%arg0: i32) -> (i32, i32) {
    %c0_i32 = arith.constant 0 : i32
    %c0_i32_0 = arith.constant 0 : i32
    return %arg0, %c0_i32 : i32, i32
  }
  func.func @transform_1(%arg0: i32) -> (i32, i32) {
    %c0_i32 = arith.constant 0 : i32
    %c0_i32_0 = arith.constant 0 : i32
    %c0_i32_1 = arith.constant 0 : i32
    return %c0_i32, %c0_i32_0 : i32, i32
  }
  func.func @transform_2(%arg0: i32) -> (i32, i32) {
    %c0_i32 = arith.constant 0 : i32
    %c0_i32_0 = arith.constant 0 : i32
    %c0_i32_1 = arith.constant 0 : i32
    return %c0_i32, %c0_i32_0 : i32, i32
  }
  func.func @transform_3(%arg0: i32) -> (i32, i32) {
    %c0_i32 = arith.constant 0 : i32
    %c0_i32_0 = arith.constant 0 : i32
    %c0_i32_1 = arith.constant 0 : i32
    return %c0_i32, %c0_i32_0 : i32, i32
  }
  func.func @transform_4(%arg0: i32) -> (i32, i32) {
    %c0_i32 = arith.constant 0 : i32
    %c0_i32_0 = arith.constant 0 : i32
    %c0_i32_1 = arith.constant 0 : i32
    return %c0_i32, %c0_i32_0 : i32, i32
  }
  func.func @transform_5(%arg0: i32) -> (i32, i32) {
    %c0_i32 = arith.constant 0 : i32
    %c0_i32_0 = arith.constant 0 : i32
    %c0_i32_1 = arith.constant 0 : i32
    return %c0_i32, %c0_i32_0 : i32, i32
  }
  func.func @transform_6(%arg0: i32) -> (i32, i32) {
    %c0_i32 = arith.constant 0 : i32
    %c0_i32_0 = arith.constant 0 : i32
    %c0_i32_1 = arith.constant 0 : i32
    return %c0_i32, %c0_i32_0 : i32, i32
  }
  func.func @transform_7(%arg0: i32) -> (i32, i32) {
    %c0_i32 = arith.constant 0 : i32
    %c0_i32_0 = arith.constant 0 : i32
    %c0_i32_1 = arith.constant 0 : i32
    return %c0_i32, %c0_i32_0 : i32, i32
  }
  func.func @transform_8(%arg0: i32) -> (i32, i32) {
    %c0_i32 = arith.constant 0 : i32
    %c0_i32_0 = arith.constant 0 : i32
    %c0_i32_1 = arith.constant 0 : i32
    return %c0_i32, %c0_i32_0 : i32, i32
  }
  func.func @transform_9(%arg0: i32) -> (i32, i32) {
    %c0_i32 = arith.constant 0 : i32
    %c0_i32_0 = arith.constant 0 : i32
    return %arg0, %c0_i32 : i32, i32
  }
}

</mosaic_0001>

<bundles_post_ra>
// kernel: nerf_forward.1
= control target key start
LH: loop header
LB: loop body
LE: loop exit
PB: predicated region body
PF: predicated region fallthrough
CT: control target
= control target key end

     0   :  { %14 = vsyncpa [#allocation3], 0  ;;  %s1534_s30 = smov 0   ;;  %s1953_s0 = inlined_call_operand.vmem [shape: bf16[1024,128], index: 0, kind: input, shape index: {}]   ;;  %s1954_s1 = inlined_call_operand.vmem [shape: bf16[128,256], index: 1, kind: input, shape index: {}]   ;;  %s1955_s2 = inlined_call_operand.vmem [shape: f32[1,256], index: 2, kind: input, shape index: {}]   ;;  %s1956_s3 = inlined_call_operand.vmem [shape: bf16[256,256], index: 3, kind: input, shape index: {}]   ;;  %s1957_s4 = inlined_call_operand.vmem [shape: f32[1,256], index: 4, kind: input, shape index: {}]   ;;  %s1958_s5 = inlined_call_operand.vmem [shape: bf16[256,256], index: 5, kind: input, shape index: {}]   ;;  %s1959_s6 = inlined_call_operand.vmem [shape: f32[1,256], index: 6, kind: input, shape index: {}]   ;;  %s1960_s7 = inlined_call_operand.vmem [shape: f32[8,256], index: 7, kind: input, shape index: {}]   ;;  %s1961_s8 = inlined_call_operand.vmem [shape: f32[1,128], index: 8, kind: input, shape index: {}]   ;;  %s1962_s9 = inlined_call_operand.hbm [shape: f32[8,128], index: 9, kind: output, shape index: {}]  }
   0x1 LB: > { %v1322_v0 = vld [vmem:[%s1954_s1 + $0x4] ss:$8 sps:$4 sm:$0xff]   ;;  %v1324_v1 = vld [vmem:[%s1954_s1] ss:$8 sps:$4 sm:$0xff]   ;;  %v1482_v2 = vmov 0   ;;  %s1190_s16 = sshll.u32 %s1480_s30, 7  ;;  %s1480_s30 = sphi %s1534_s30, %s39_s30  }
   0x2   : > { %249 = vmatprep.mubr.bf16.mxu0 %v1482_v2  ;;  %217 = vmatprep.subr.bf16.mxu0 %v1322_v0  ;;  %v1325_v3 = vld [vmem:[%s1954_s1 + $0x14] ss:$8 sps:$4 sm:$0xff]   ;;  %v1327_v4 = vld [vmem:[%s1954_s1 + $0x10] ss:$8 sps:$4 sm:$0xff]   ;;  %s41_s19 = sshra.s32 %s1190_s16, 3  ;;  %s1166_s12 = scalar_lea.vmem [#allocation2], %s1480_s30 }
   0x3   : > { %218 = vmatpush1.bf16.msra.mxu0 %v1324_v1  ;;  %v1328_v5 = vld [vmem:[%s1954_s1 + $0x24] ss:$8 sps:$4 sm:$0xff]   ;;  %s1191_s22 = sshll.u32 %s41_s19, 2  ;;  %v1330_v6 = vld [vmem:[%s1954_s1 + $0x20] ss:$8 sps:$4 sm:$0xff]   ;;  %s39_s30 = sadd.s32 1, %s1480_s30  }
   0x4   : > { %219 = vmatprep.subr.bf16.mxu0 %v1325_v3  ;;  %v1331_v7 = vld [vmem:[%s1954_s1 + $0x34] ss:$8 sps:$4 sm:$0xff]   ;;  %s1565_s29 = scalar_lea.vmem %s1953_s0, %s1191_s22  ;;  %v1333_v8 = vld [vmem:[%s1954_s1 + $0x30] ss:$8 sps:$4 sm:$0xff]   ;;  %v1334_v9 = vld [vmem:[%s1954_s1 + $0x44] ss:$8 sps:$4 sm:$0xff]  }
   0x5   : > { %v1336_v10 = vld [vmem:[%s1954_s1 + $0x40] ss:$8 sps:$4 sm:$0xff]   ;;  %v1337_v11 = vld [vmem:[%s1954_s1 + $0x54] ss:$8 sps:$4 sm:$0xff]   ;;  %v1339_v12 = vld [vmem:[%s1954_s1 + $0x50] ss:$8 sps:$4 sm:$0xff]  }
   0x6   : > { %v1340_v13 = vld [vmem:[%s1954_s1 + $0x64] ss:$8 sps:$4 sm:$0xff]   ;;  %v1356_v15 = vld [vmem:[%s1956_s3] ss:$8 sps:$4 sm:$0xff]   ;;  %v1357_v16 = vld [vmem:[%s1956_s3 + $0x14] ss:$8 sps:$4 sm:$0xff]  }
   0x7   : > { %220 = vmatpush1.bf16.msra.mxu0 %v1327_v4  ;;  %v1354_v14 = vld [vmem:[%s1956_s3 + $0x4] ss:$8 sps:$4 sm:$0xff]   ;;  %v1359_v17 = vld [vmem:[%s1956_s3 + $0x10] ss:$8 sps:$4 sm:$0xff]   ;;  %v1342_v18 = vld [vmem:[%s1954_s1 + $0x60] ss:$8 sps:$4 sm:$0xff]  }
   0x8   : > { %221 = vmatprep.subr.bf16.mxu0 %v1328_v5  ;;  %582 = vmatprep.subr.bf16.mxu1 %v1354_v14  ;;  %v1360_v19 = vld [vmem:[%s1956_s3 + $0x24] ss:$8 sps:$4 sm:$0xff]   ;;  %v1343_v20 = vld [vmem:[%s1954_s1 + $0x74] ss:$8 sps:$4 sm:$0xff]   ;;  %v1362_v21 = vld [vmem:[%s1956_s3 + $0x20] ss:$8 sps:$4 sm:$0xff]  }
   0x9   : > { %583 = vmatpush1.bf16.msra.mxu1 %v1356_v15  ;;  %v1345_v22 = vld [vmem:[%s1954_s1 + $0x70] ss:$8 sps:$4 sm:$0xff]   ;;  %v1363_v23 = vld [vmem:[%s1956_s3 + $0x34] ss:$8 sps:$4 sm:$0xff]   ;;  %v1346_v24 = vld [vmem:[%s1565_s29] sm:$0xff]   ;;  %p36_p0 = scmp.ge.s32.totalorder %s39_s30, 8  }
   0xa   : > { %584 = vmatprep.subr.bf16.mxu1 %v1357_v16  ;;  %v1365_v25 = vld [vmem:[%s1956_s3 + $0x30] ss:$8 sps:$4 sm:$0xff]   ;;  %v1366_v26 = vld [vmem:[%s1956_s3 + $0x44] ss:$8 sps:$4 sm:$0xff]   ;;  %v1368_v27 = vld [vmem:[%s1956_s3 + $0x40] ss:$8 sps:$4 sm:$0xff]  }
   0xb   : > { %222 = vmatpush1.bf16.msra.mxu0 %v1330_v6  ;;  %v1369_v28 = vld [vmem:[%s1956_s3 + $0x54] ss:$8 sps:$4 sm:$0xff]   ;;  %v1347_v29 = vld [vmem:[%s1565_s29 + $0x8] sm:$0xff]   ;;  %v1371_v30 = vld [vmem:[%s1956_s3 + $0x50] ss:$8 sps:$4 sm:$0xff]   ;;  %s1483_s13 = smov (%p36_p0), [#allocation2]  }
   0xc   : > { %223 = vmatprep.subr.bf16.mxu0 %v1331_v7  ;;  %v1372_v31 = vld [vmem:[%s1956_s3 + $0x64] ss:$8 sps:$4 sm:$0xff]   ;;  %v1374_v32 = vld [vmem:[%s1956_s3 + $0x60] ss:$8 sps:$4 sm:$0xff]   ;;  %v1375_v33 = vld [vmem:[%s1956_s3 + $0x74] ss:$8 sps:$4 sm:$0xff]  }
   0xd   : > { %585 = vmatpush1.bf16.msra.mxu1 %v1359_v17  ;;  %v1348_v34 = vld [vmem:[%s1565_s29 + $0x10] sm:$0xff]   ;;  %v1378_v36 = vld [vmem:[%s1956_s3 + $0x84] ss:$8 sps:$4 sm:$0xff]   ;;  %v1380_v37 = vld [vmem:[%s1956_s3 + $0x80] ss:$8 sps:$4 sm:$0xff]  }
   0xe   : > { %586 = vmatprep.subr.bf16.mxu1 %v1360_v19  ;;  %v1377_v35 = vld [vmem:[%s1956_s3 + $0x70] ss:$8 sps:$4 sm:$0xff]   ;;  %v1381_v38 = vld [vmem:[%s1956_s3 + $0x94] ss:$8 sps:$4 sm:$0xff]   ;;  %v1384_v41 = vld [vmem:[%s1956_s3 + $0xa4] ss:$8 sps:$4 sm:$0xff]  }
   0xf   : > { %224 = vmatpush1.bf16.msra.mxu0 %v1333_v8  ;;  %v1349_v39 = vld [vmem:[%s1565_s29 + $0x18] sm:$0xff]   ;;  %v1386_v42 = vld [vmem:[%s1956_s3 + $0xa0] ss:$8 sps:$4 sm:$0xff]   ;;  %v1390_v46 = vld [vmem:[%s1956_s3 + $0xc4] ss:$8 sps:$4 sm:$0xff]  }
  0x10   : > { %225 = vmatprep.subr.bf16.mxu0 %v1334_v9  ;;  %v1383_v40 = vld [vmem:[%s1956_s3 + $0x90] ss:$8 sps:$4 sm:$0xff]   ;;  %v1387_v43 = vld [vmem:[%s1956_s3 + $0xb4] ss:$8 sps:$4 sm:$0xff]   ;;  %v1350_v44 = vld [vmem:[%s1565_s29 + $0x20] sm:$0xff]  }
  0x11   : > { %587 = vmatpush1.bf16.msra.mxu1 %v1362_v21  ;;  %v1389_v45 = vld [vmem:[%s1956_s3 + $0xb0] ss:$8 sps:$4 sm:$0xff]   ;;  %v1392_v47 = vld [vmem:[%s1956_s3 + $0xc0] ss:$8 sps:$4 sm:$0xff]   ;;  %v1393_v48 = vld [vmem:[%s1956_s3 + $0xd4] ss:$8 sps:$4 sm:$0xff]  }
  0x12   : > { %588 = vmatprep.subr.bf16.mxu1 %v1363_v23  ;;  %v1351_v49 = vld [vmem:[%s1565_s29 + $0x28] sm:$0xff]   ;;  %v1352_v50 = vld [vmem:[%s1565_s29 + $0x30] sm:$0xff]   ;;  %v1353_v51 = vld [vmem:[%s1565_s29 + $0x38] sm:$0xff]   ;;  %s1174_s29 = sshll.u32 (%p36_p0), %s1483_s13, 4  ;;  %s1175_s29 = int_to_ptr.vmem [resolvable:$true] %s1174_s29 }
  0x13   : > { %226 = vmatpush1.bf16.msra.mxu0 %v1336_v10  ;;  %v1395_v52 = vld [vmem:[%s1956_s3 + $0xd0] ss:$8 sps:$4 sm:$0xff]   ;;  %v1396_v53 = vld [vmem:[%s1956_s3 + $0xe4] ss:$8 sps:$4 sm:$0xff]   ;;  %v1398_v54 = vld [vmem:[%s1956_s3 + $0xe0] ss:$8 sps:$4 sm:$0xff]   ;;  %p1455_p2 = scmp.lt.s32.totalorder (%p36_p0), %s1175_s29, %s1175_s29 }
  0x14   : > { %227 = vmatprep.subr.bf16.mxu0 %v1337_v11  ;;  %v1399_v55 = vld [vmem:[%s1956_s3 + $0xf4] ss:$8 sps:$4 sm:$0xff]   ;;  %v1401_v56 = vld [vmem:[%s1956_s3 + $0xf0] ss:$8 sps:$4 sm:$0xff]   ;;  %v1402_v57 = vld [vmem:[%s1958_s5] ss:$8 sps:$4 sm:$0xff]  }
  0x15   : > { %589 = vmatpush1.bf16.msra.mxu1 %v1365_v25  ;;  %v1404_v58 = vld [vmem:[%s1958_s5 + $0x4] ss:$8 sps:$4 sm:$0xff]   ;;  %v1407_v59 = vld [vmem:[%s1958_s5 + $0x14] ss:$8 sps:$4 sm:$0xff]   ;;  %v1405_v60 = vld [vmem:[%s1958_s5 + $0x10] ss:$8 sps:$4 sm:$0xff]  }
  0x16   : > { %590 = vmatprep.subr.bf16.mxu1 %v1366_v26  ;;  %v1410_v61 = vld [vmem:[%s1958_s5 + $0x24] ss:$8 sps:$4 sm:$0xff]   ;;  %v1408_v62 = vld [vmem:[%s1958_s5 + $0x20] ss:$8 sps:$4 sm:$0xff]   ;;  %v1413_v63 = vld [vmem:[%s1958_s5 + $0x34] ss:$8 sps:$4 sm:$0xff]  }
  0x17   : > { %228 = vmatpush1.bf16.msra.mxu0 %v1339_v12  ;;  %v1411_v0 = vld [vmem:[%s1958_s5 + $0x30] ss:$8 sps:$4 sm:$0xff]   ;;  %v1416_v1 = vld [vmem:[%s1958_s5 + $0x44] ss:$8 sps:$4 sm:$0xff]   ;;  %v1419_v3 = vld [vmem:[%s1958_s5 + $0x54] ss:$8 sps:$4 sm:$0xff]  }
  0x18   : > { %229 = vmatprep.subr.bf16.mxu0 %v1340_v13  ;;  %v1417_v4 = vld [vmem:[%s1958_s5 + $0x50] ss:$8 sps:$4 sm:$0xff]   ;;  %v1422_v5 = vld [vmem:[%s1958_s5 + $0x64] ss:$8 sps:$4 sm:$0xff]   ;;  %v1420_v6 = vld [vmem:[%s1958_s5 + $0x60] ss:$8 sps:$4 sm:$0xff]  }
  0x19   : > { %591 = vmatpush1.bf16.msra.mxu1 %v1368_v27  ;;  %v1425_v7 = vld [vmem:[%s1958_s5 + $0x74] ss:$8 sps:$4 sm:$0xff]   ;;  %v1423_v8 = vld [vmem:[%s1958_s5 + $0x70] ss:$8 sps:$4 sm:$0xff]   ;;  %v1428_v9 = vld [vmem:[%s1958_s5 + $0x84] ss:$8 sps:$4 sm:$0xff]  }
  0x1a   : > { %592 = vmatprep.subr.bf16.mxu1 %v1369_v28  ;;  %v1426_v10 = vld [vmem:[%s1958_s5 + $0x80] ss:$8 sps:$4 sm:$0xff]   ;;  %v1431_v11 = vld [vmem:[%s1958_s5 + $0x94] ss:$8 sps:$4 sm:$0xff]   ;;  %v1429_v12 = vld [vmem:[%s1958_s5 + $0x90] ss:$8 sps:$4 sm:$0xff]  }
  0x1b   : > { %230 = vmatpush1.bf16.msra.mxu0 %v1342_v18  ;;  %v1434_v13 = vld [vmem:[%s1958_s5 + $0xa4] ss:$8 sps:$4 sm:$0xff]   ;;  %v1432_v14 = vld [vmem:[%s1958_s5 + $0xa0] ss:$8 sps:$4 sm:$0xff]   ;;  %v1437_v15 = vld [vmem:[%s1958_s5 + $0xb4] ss:$8 sps:$4 sm:$0xff]   ;;  %v79_v18 = vlaneseq }
  0x1c   : > { %231 = vmatprep.subr.bf16.mxu0 %v1343_v20  ;;  %v1435_v16 = vld [vmem:[%s1958_s5 + $0xb0] ss:$8 sps:$4 sm:$0xff]   ;;  %v1440_v17 = vld [vmem:[%s1958_s5 + $0xc4] ss:$8 sps:$4 sm:$0xff]   ;;  %v1438_v19 = vld [vmem:[%s1958_s5 + $0xc0] ss:$8 sps:$4 sm:$0xff]  }
  0x1d   : > { %593 = vmatpush1.bf16.msra.mxu1 %v1371_v30  ;;  %v1443_v20 = vld [vmem:[%s1958_s5 + $0xd4] ss:$8 sps:$4 sm:$0xff]   ;;  %v80_v21 = vshrl.u32 %v79_v18, 7  ;;  %s1450_s14 = scalar_lea.vmem (%p36_p0), %s1175_s29, 128 }
  0x1e   : > { %594 = vmatprep.subr.bf16.mxu1 %v1372_v31  ;;  %p1451_p1 = scmp.ne.s32.totalorder (%p36_p0), %s1175_s29, %s1450_s14  ;;  %p1456_p3 = scmp.lt.s32.totalorder (%p36_p0), %s1450_s14, %s1450_s14 }
  0x1f   : > { %232 = vmatpush1.bf16.msra.mxu0 %v1345_v22  ;;  %v1441_v22 = vld [vmem:[%s1958_s5 + $0xd0] ss:$8 sps:$4 sm:$0xff]   ;;  %v1789_v23 = vsub.s32 0, %v80_v21  ;;  %v1794_v25 = vsub.s32 1, %v80_v21 }
  0x20   : > { %947 = vmatprep.subr.bf16.mxu0 %v1404_v58  ;;  %p1457_p4 = por (%p36_p0), %p1456_p3, %p1455_p2 }
  0x21   : > { %595 = vmatpush1.bf16.msra.mxu1 %v1374_v32 }
  0x22   : > { %250 = vmatmul.mubr.bf16.vlgmr.msra.gmra.mrb[0].mxu0 %v1346_v24  ;;  %596 = vmatprep.subr.bf16.mxu1 %v1375_v33  ;;  %v77_v24 = vld [vmem:[%s1955_s2] sm:$0x3]  ;;  %p1458_p5 = pnand (%p36_p0), %p1457_p4, %p1451_p1 }
  0x23   : > { %259 = vmatprep.mubr.bf16.mxu0 %v1482_v2  ;;  %948 = vmatpush1.bf16.msra.mxu0 %v1402_v57  ;;  %v1797_v26 = vrot.slane %v77_v24, %v1789_v23  ;;  %v1800_v27 = vrot.slane %v77_v24, %v1794_v25 }
  0x24   : > { %949 = vmatprep.subr.bf16.mxu0 %v1407_v59 }
  0x25   : > { %597 = vmatpush1.bf16.msra.mxu1 %v1377_v35 }
  0x26   : > { %598 = vmatprep.subr.bf16.mxu1 %v1378_v36 }
  0x27   : > { %950 = vmatpush1.bf16.msra.mxu0 %v1405_v60 }
  0x28   : > { %951 = vmatprep.subr.bf16.mxu0 %v1410_v61 }
  0x29   : > { %599 = vmatpush1.bf16.msra.mxu1 %v1380_v37 }
  0x2a   : > { %260 = vmatmul.mubr.bf16.gmra.mrb[4].mxu0 %v1347_v29  ;;  %600 = vmatprep.subr.bf16.mxu1 %v1381_v38 }
  0x2b   : > { %269 = vmatprep.mubr.bf16.mxu0 %v1482_v2  ;;  %952 = vmatpush1.bf16.msra.mxu0 %v1408_v62 }
  0x2c   : > { %953 = vmatprep.subr.bf16.mxu0 %v1413_v63 }
  0x2d   : > { %601 = vmatpush1.bf16.msra.mxu1 %v1383_v40 }
  0x2e   : > { %602 = vmatprep.subr.bf16.mxu1 %v1384_v41 }
  0x2f   : > { %954 = vmatpush1.bf16.msra.mxu0 %v1411_v0 }
  0x30   : > { %955 = vmatprep.subr.bf16.mxu0 %v1416_v1 }
  0x31   : > { %603 = vmatpush1.bf16.msra.mxu1 %v1386_v42 }
  0x32   : > { %270 = vmatmul.mubr.bf16.gmra.mrb[8].mxu0 %v1348_v34  ;;  %604 = vmatprep.subr.bf16.mxu1 %v1387_v43 }
  0x33   : > { %279 = vmatprep.mubr.bf16.mxu0 %v1482_v2 }
  0x35   : > { %605 = vmatpush1.bf16.msra.mxu1 %v1389_v45 }
  0x36   : > { %606 = vmatprep.subr.bf16.mxu1 %v1390_v46 }
  0x39   : > { %607 = vmatpush1.bf16.msra.mxu1 %v1392_v47 }
  0x3a   : > { %280 = vmatmul.mubr.bf16.gmra.mrb[12].mxu0 %v1349_v39  ;;  %608 = vmatprep.subr.bf16.mxu1 %v1393_v48 }
  0x3b   : > { %289 = vmatprep.mubr.bf16.mxu0 %v1482_v2 }
  0x3d   : > { %609 = vmatpush1.bf16.msra.mxu1 %v1395_v52 }
  0x3e   : > { %610 = vmatprep.subr.bf16.mxu1 %v1396_v53 }
  0x41   : > { %611 = vmatpush1.bf16.msra.mxu1 %v1398_v54 }
  0x42   : > { %290 = vmatmul.mubr.bf16.gmra.mrb[16].mxu0 %v1350_v44  ;;  %612 = vmatprep.subr.bf16.mxu1 %v1399_v55 }
  0x43   : > { %299 = vmatprep.mubr.bf16.mxu0 %v1482_v2 }
  0x45   : > { %613 = vmatpush1.bf16.msra.mxu1 %v1401_v56 }
  0x4a   : > { %300 = vmatmul.mubr.bf16.gmra.mrb[20].mxu0 %v1351_v49 }
  0x4b   : > { %309 = vmatprep.mubr.bf16.mxu0 %v1482_v2 }
  0x52   : > { %310 = vmatmul.mubr.bf16.gmra.mrb[24].mxu0 %v1352_v50 }
  0x53   : > { %319 = vmatprep.mubr.bf16.mxu0 %v1482_v2  ;;  %v1414_v2 = vld [vmem:[%s1958_s5 + $0x40] ss:$8 sps:$4 sm:$0xff]  }
  0x54   : > { %956 = vmatpush1.bf16.msra.mxu0 %v1414_v2 }
  0x55   : > { %957 = vmatprep.subr.bf16.mxu0 %v1419_v3 }
  0x58   : > { %958 = vmatpush1.bf16.msra.mxu0 %v1417_v4 }
  0x59   : > { %959 = vmatprep.subr.bf16.mxu0 %v1422_v5 }
  0x5a   : > { %320 = vmatmul.mubr.bf16.gmra.mrb[28].mxu0 %v1353_v51 }
  0x5c   : > { %960 = vmatpush1.bf16.msra.mxu0 %v1420_v6 }
  0x5d   : > { %961 = vmatprep.subr.bf16.mxu0 %v1425_v7 }
  0x60   : > { %962 = vmatpush1.bf16.msra.mxu0 %v1423_v8 }
  0x61   : > { %963 = vmatprep.subr.bf16.mxu0 %v1428_v9 }
  0x64   : > { %964 = vmatpush1.bf16.msra.mxu0 %v1426_v10 }
  0x65   : > { %965 = vmatprep.subr.bf16.mxu0 %v1431_v11 }
  0x68   : > { %966 = vmatpush1.bf16.msra.mxu0 %v1429_v12 }
  0x69   : > { %967 = vmatprep.subr.bf16.mxu0 %v1434_v13 }
  0x6c   : > { %968 = vmatpush1.bf16.msra.mxu0 %v1432_v14 }
  0x6d   : > { %969 = vmatprep.subr.bf16.mxu0 %v1437_v15 }
  0x70   : > { %970 = vmatpush1.bf16.msra.mxu0 %v1435_v16 }
  0x71   : > { %971 = vmatprep.subr.bf16.mxu0 %v1440_v17 }
  0x74   : > { %972 = vmatpush1.bf16.msra.mxu0 %v1438_v19 }
  0x75   : > { %973 = vmatprep.subr.bf16.mxu0 %v1443_v20 }
  0x78   : > { %974 = vmatpush1.bf16.msra.mxu0 %v1441_v22 }
  0xf5   : > { %v251_v28 = vpop.f32.mrb[0].mxu0 }
  0xf6   : > { %v252_v29 = vadd.f32 %v251_v28, %v1797_v26  ;;  %v253_v30 = vpop.f32.mrb[1].mxu0 }
  0xf7   : > { %v254_v31 = vadd.f32 %v253_v30, %v1800_v27  ;;  %v255_v32 = vpop.f32.mrb[2].mxu0 }
  0xf8   : > { %v256_v33 = vadd.f32 %v255_v32, %v1797_v26  ;;  %v257_v34 = vpop.f32.mrb[3].mxu0  ;;  %v330_v36 = vmax.f32 %v252_v29, 0.0 }
  0xf9   : > { %v258_v35 = vadd.f32 %v257_v34, %v1800_v27  ;;  %v331_v38 = vmax.f32 %v254_v31, 0.0 }
  0xfa   : > { %v332_v37 = vmax.f32 %v256_v33, 0.0 }
  0xfb   : > { %v333_v39 = vmax.f32 %v258_v35, 0.0 }
  0xfc   : > { %v362_v40 = vpack.c.bf16 %v332_v37, %v330_v36 }
  0xfd   : > { %v261_v41 = vpop.f32.mrb[4].mxu0  ;;  %v363_v42 = vpack.c.bf16 %v333_v39, %v331_v38 }
  0xfe   : > { %v262_v43 = vadd.f32 %v261_v41, %v1797_v26  ;;  %v263_v44 = vpop.f32.mrb[5].mxu0 }
  0xff   : > { %v264_v45 = vadd.f32 %v263_v44, %v1800_v27  ;;  %v265_v46 = vpop.f32.mrb[6].mxu0  ;;  %614 = vmatprep.mubr.bf16.mxu1 %v363_v42 }
 0x100   : > { %v266_v47 = vadd.f32 %v265_v46, %v1797_v26  ;;  %v267_v48 = vpop.f32.mrb[7].mxu0  ;;  %615 = vmatmul.mubr.bf16.vlgmr.msra.gmra.mrb[0].mxu1 %v362_v40  ;;  %v334_v50 = vmax.f32 %v262_v43, 0.0 }
 0x101   : > { %v268_v49 = vadd.f32 %v267_v48, %v1800_v27  ;;  %v335_v52 = vmax.f32 %v264_v45, 0.0 }
 0x102   : > { %v336_v51 = vmax.f32 %v266_v47, 0.0 }
 0x103   : > { %v337_v53 = vmax.f32 %v268_v49, 0.0 }
 0x104   : > { %v364_v54 = vpack.c.bf16 %v336_v51, %v334_v50 }
 0x105   : > { %v365_v55 = vpack.c.bf16 %v337_v53, %v335_v52  ;;  %v271_v56 = vpop.f32.mrb[8].mxu0 }
 0x106   : > { %v272_v57 = vadd.f32 %v271_v56, %v1797_v26  ;;  %v273_v58 = vpop.f32.mrb[9].mxu0 }
 0x107   : > { %v274_v59 = vadd.f32 %v273_v58, %v1800_v27  ;;  %v275_v60 = vpop.f32.mrb[10].mxu0  ;;  %624 = vmatprep.mubr.bf16.mxu1 %v365_v55 }
 0x108   : > { %v276_v61 = vadd.f32 %v275_v60, %v1797_v26  ;;  %v277_v62 = vpop.f32.mrb[11].mxu0  ;;  %625 = vmatmul.mubr.bf16.gmra.mrb[4].mxu1 %v364_v54  ;;  %v338_v0 = vmax.f32 %v272_v57, 0.0 }
 0x109   : > { %v278_v63 = vadd.f32 %v277_v62, %v1800_v27  ;;  %v339_v2 = vmax.f32 %v274_v59, 0.0 }
 0x10a   : > { %v340_v1 = vmax.f32 %v276_v61, 0.0 }
 0x10b   : > { %v341_v3 = vmax.f32 %v278_v63, 0.0 }
 0x10c   : > { %v366_v4 = vpack.c.bf16 %v340_v1, %v338_v0 }
 0x10d   : > { %v367_v5 = vpack.c.bf16 %v341_v3, %v339_v2  ;;  %v281_v6 = vpop.f32.mrb[12].mxu0 }
 0x10e   : > { %v282_v7 = vadd.f32 %v281_v6, %v1797_v26  ;;  %v283_v8 = vpop.f32.mrb[13].mxu0 }
 0x10f   : > { %v284_v9 = vadd.f32 %v283_v8, %v1800_v27  ;;  %v285_v10 = vpop.f32.mrb[14].mxu0  ;;  %634 = vmatprep.mubr.bf16.mxu1 %v367_v5 }
 0x110   : > { %v286_v11 = vadd.f32 %v285_v10, %v1797_v26  ;;  %v287_v12 = vpop.f32.mrb[15].mxu0  ;;  %635 = vmatmul.mubr.bf16.gmra.mrb[8].mxu1 %v366_v4  ;;  %v342_v14 = vmax.f32 %v282_v7, 0.0 }
 0x111   : > { %v288_v13 = vadd.f32 %v287_v12, %v1800_v27  ;;  %v343_v16 = vmax.f32 %v284_v9, 0.0 }
 0x112   : > { %v344_v15 = vmax.f32 %v286_v11, 0.0 }
 0x113   : > { %v345_v17 = vmax.f32 %v288_v13, 0.0 }
 0x114   : > { %v368_v18 = vpack.c.bf16 %v344_v15, %v342_v14 }
 0x115   : > { %v369_v19 = vpack.c.bf16 %v345_v17, %v343_v16  ;;  %v291_v20 = vpop.f32.mrb[16].mxu0  ;;  %v1446_v16 = vld [vmem:[%s1958_s5 + $0xe4] ss:$8 sps:$4 sm:$0xff]   ;;  %v1447_v17 = vld [vmem:[%s1958_s5 + $0xf0] ss:$8 sps:$4 sm:$0xff]  }
 0x116   : > { %v292_v21 = vadd.f32 %v291_v20, %v1797_v26  ;;  %v293_v22 = vpop.f32.mrb[17].mxu0  ;;  %975 = vmatprep.subr.bf16.mxu0 %v1446_v16 }
 0x117   : > { %v294_v24 = vadd.f32 %v293_v22, %v1800_v27  ;;  %v295_v28 = vpop.f32.mrb[18].mxu0  ;;  %644 = vmatprep.mubr.bf16.mxu1 %v369_v19 }
 0x118   : > { %v296_v29 = vadd.f32 %v295_v28, %v1797_v26  ;;  %v297_v30 = vpop.f32.mrb[19].mxu0  ;;  %645 = vmatmul.mubr.bf16.gmra.mrb[12].mxu1 %v368_v18  ;;  %v346_v32 = vmax.f32 %v292_v21, 0.0  ;;  %v410_v18 = vld [vmem:[%s1957_s4] sm:$0x3] }
 0x119   : > { %v298_v31 = vadd.f32 %v297_v30, %v1800_v27  ;;  %v347_v34 = vmax.f32 %v294_v24, 0.0  ;;  %v1850_v19 = vrot.slane %v410_v18, %v1789_v23  ;;  %v1853_v20 = vrot.slane %v410_v18, %v1794_v25 }
 0x11a   : > { %v348_v33 = vmax.f32 %v296_v29, 0.0 }
 0x11b   : > { %v349_v35 = vmax.f32 %v298_v31, 0.0 }
 0x11c   : > { %v370_v36 = vpack.c.bf16 %v348_v33, %v346_v32 }
 0x11d   : > { %v371_v37 = vpack.c.bf16 %v349_v35, %v347_v34  ;;  %v301_v38 = vpop.f32.mrb[20].mxu0 }
 0x11e   : > { %v302_v39 = vadd.f32 %v301_v38, %v1797_v26  ;;  %v303_v40 = vpop.f32.mrb[21].mxu0 }
 0x11f   : > { %v304_v41 = vadd.f32 %v303_v40, %v1800_v27  ;;  %v305_v42 = vpop.f32.mrb[22].mxu0  ;;  %654 = vmatprep.mubr.bf16.mxu1 %v371_v37 }
 0x120   : > { %v306_v43 = vadd.f32 %v305_v42, %v1797_v26  ;;  %v307_v44 = vpop.f32.mrb[23].mxu0  ;;  %655 = vmatmul.mubr.bf16.gmra.mrb[16].mxu1 %v370_v36  ;;  %v350_v46 = vmax.f32 %v302_v39, 0.0 }
 0x121   : > { %v308_v45 = vadd.f32 %v307_v44, %v1800_v27  ;;  %v351_v48 = vmax.f32 %v304_v41, 0.0 }
 0x122   : > { %v352_v47 = vmax.f32 %v306_v43, 0.0 }
 0x123   : > { %v353_v49 = vmax.f32 %v308_v45, 0.0 }
 0x124   : > { %v372_v50 = vpack.c.bf16 %v352_v47, %v350_v46 }
 0x125   : > { %v373_v51 = vpack.c.bf16 %v353_v49, %v351_v48  ;;  %v311_v52 = vpop.f32.mrb[24].mxu0 }
 0x126   : > { %v312_v53 = vadd.f32 %v311_v52, %v1797_v26  ;;  %v313_v54 = vpop.f32.mrb[25].mxu0 }
 0x127   : > { %v314_v55 = vadd.f32 %v313_v54, %v1800_v27  ;;  %v315_v56 = vpop.f32.mrb[26].mxu0  ;;  %664 = vmatprep.mubr.bf16.mxu1 %v373_v51 }
 0x128   : > { %v316_v57 = vadd.f32 %v315_v56, %v1797_v26  ;;  %v317_v58 = vpop.f32.mrb[27].mxu0  ;;  %665 = vmatmul.mubr.bf16.gmra.mrb[20].mxu1 %v372_v50  ;;  %v354_v60 = vmax.f32 %v312_v53, 0.0 }
 0x129   : > { %v318_v59 = vadd.f32 %v317_v58, %v1800_v27  ;;  %v355_v62 = vmax.f32 %v314_v55, 0.0 }
 0x12a   : > { %v356_v61 = vmax.f32 %v316_v57, 0.0 }
 0x12b   : > { %v357_v63 = vmax.f32 %v318_v59, 0.0 }
 0x12c   : > { %v374_v0 = vpack.c.bf16 %v356_v61, %v354_v60 }
 0x12d   : > { %v375_v1 = vpack.c.bf16 %v357_v63, %v355_v62  ;;  %v321_v2 = vpop.f32.mrb[28].mxu0 }
 0x12e   : > { %v322_v3 = vadd.f32 %v321_v2, %v1797_v26  ;;  %v323_v4 = vpop.f32.mrb[29].mxu0 }
 0x12f   : > { %v324_v5 = vadd.f32 %v323_v4, %v1800_v27  ;;  %v325_v6 = vpop.f32.mrb[30].mxu0  ;;  %674 = vmatprep.mubr.bf16.mxu1 %v375_v1 }
 0x130   : > { %v326_v7 = vadd.f32 %v325_v6, %v1797_v26  ;;  %v327_v8 = vpop.f32.mrb[31].mxu0  ;;  %675 = vmatmul.mubr.bf16.gmra.mrb[24].mxu1 %v374_v0  ;;  %v358_v10 = vmax.f32 %v322_v3, 0.0  ;;  %v1444_v26 = vld [vmem:[%s1958_s5 + $0xe0] ss:$8 sps:$4 sm:$0xff]  }
 0x131   : > { %v328_v9 = vadd.f32 %v327_v8, %v1800_v27  ;;  %v359_v12 = vmax.f32 %v324_v5, 0.0  ;;  %976 = vmatpush1.bf16.msra.mxu0 %v1444_v26  ;;  %v1449_v27 = vld [vmem:[%s1958_s5 + $0xf4] ss:$8 sps:$4 sm:$0xff]  }
 0x132   : > { %v360_v11 = vmax.f32 %v326_v7, 0.0  ;;  %977 = vmatprep.subr.bf16.mxu0 %v1449_v27 }
 0x133   : > { %v361_v13 = vmax.f32 %v328_v9, 0.0 }
 0x134   : > { %v376_v14 = vpack.c.bf16 %v360_v11, %v358_v10 }
 0x135   : > { %v377_v15 = vpack.c.bf16 %v361_v13, %v359_v12  ;;  %978 = vmatpush1.bf16.msra.mxu0 %v1447_v17 }
 0x137   : > { %684 = vmatprep.mubr.bf16.mxu1 %v377_v15 }
 0x138   : > { %685 = vmatmul.mubr.bf16.gmra.mrb[28].mxu1 %v376_v14 }
 0x1d3   : > { %v616_v21 = vpop.f32.mrb[0].mxu1 }
 0x1d4   : > { %v617_v22 = vadd.f32 %v616_v21, %v1850_v19  ;;  %v618_v24 = vpop.f32.mrb[1].mxu1 }
 0x1d5   : > { %v619_v28 = vadd.f32 %v618_v24, %v1853_v20  ;;  %v620_v29 = vpop.f32.mrb[2].mxu1 }
 0x1d6   : > { %v621_v30 = vadd.f32 %v620_v29, %v1850_v19  ;;  %v622_v31 = vpop.f32.mrb[3].mxu1  ;;  %v695_v33 = vmax.f32 %v617_v22, 0.0 }
 0x1d7   : > { %v623_v32 = vadd.f32 %v622_v31, %v1853_v20  ;;  %v696_v35 = vmax.f32 %v619_v28, 0.0 }
 0x1d8   : > { %v697_v34 = vmax.f32 %v621_v30, 0.0 }
 0x1d9   : > { %v698_v36 = vmax.f32 %v623_v32, 0.0 }
 0x1da   : > { %v727_v37 = vpack.c.bf16 %v697_v34, %v695_v33 }
 0x1db   : > { %v728_v38 = vpack.c.bf16 %v698_v36, %v696_v35  ;;  %v626_v39 = vpop.f32.mrb[4].mxu1 }
 0x1dc   : > { %v627_v40 = vadd.f32 %v626_v39, %v1850_v19  ;;  %v628_v41 = vpop.f32.mrb[5].mxu1 }
 0x1dd   : > { %v629_v42 = vadd.f32 %v628_v41, %v1853_v20  ;;  %v630_v43 = vpop.f32.mrb[6].mxu1  ;;  %979 = vmatprep.mubr.bf16.mxu0 %v728_v38 }
 0x1de   : > { %v631_v44 = vadd.f32 %v630_v43, %v1850_v19  ;;  %v632_v45 = vpop.f32.mrb[7].mxu1  ;;  %980 = vmatmul.mubr.bf16.vlgmr.msra.gmra.mrb[32].mxu0 %v727_v37  ;;  %v699_v47 = vmax.f32 %v627_v40, 0.0 }
 0x1df   : > { %v633_v46 = vadd.f32 %v632_v45, %v1853_v20  ;;  %v700_v49 = vmax.f32 %v629_v42, 0.0 }
 0x1e0   : > { %v701_v48 = vmax.f32 %v631_v44, 0.0 }
 0x1e1   : > { %v702_v50 = vmax.f32 %v633_v46, 0.0 }
 0x1e2   : > { %v729_v51 = vpack.c.bf16 %v701_v48, %v699_v47 }
 0x1e3   : > { %v730_v52 = vpack.c.bf16 %v702_v50, %v700_v49  ;;  %v636_v53 = vpop.f32.mrb[8].mxu1 }
 0x1e4   : > { %v637_v54 = vadd.f32 %v636_v53, %v1850_v19  ;;  %v638_v55 = vpop.f32.mrb[9].mxu1 }
 0x1e5   : > { %v639_v56 = vadd.f32 %v638_v55, %v1853_v20  ;;  %v640_v57 = vpop.f32.mrb[10].mxu1  ;;  %989 = vmatprep.mubr.bf16.mxu0 %v730_v52 }
 0x1e6   : > { %v641_v58 = vadd.f32 %v640_v57, %v1850_v19  ;;  %v642_v59 = vpop.f32.mrb[11].mxu1  ;;  %990 = vmatmul.mubr.bf16.gmra.mrb[36].mxu0 %v729_v51  ;;  %v703_v61 = vmax.f32 %v637_v54, 0.0 }
 0x1e7   : > { %v643_v60 = vadd.f32 %v642_v59, %v1853_v20  ;;  %v704_v63 = vmax.f32 %v639_v56, 0.0 }
 0x1e8   : > { %v705_v62 = vmax.f32 %v641_v58, 0.0 }
 0x1e9   : > { %v706_v0 = vmax.f32 %v643_v60, 0.0 }
 0x1ea   : > { %v731_v1 = vpack.c.bf16 %v705_v62, %v703_v61 }
 0x1eb   : > { %v732_v2 = vpack.c.bf16 %v706_v0, %v704_v63  ;;  %v646_v3 = vpop.f32.mrb[12].mxu1 }
 0x1ec   : > { %v647_v4 = vadd.f32 %v646_v3, %v1850_v19  ;;  %v648_v5 = vpop.f32.mrb[13].mxu1 }
 0x1ed   : > { %v649_v6 = vadd.f32 %v648_v5, %v1853_v20  ;;  %v650_v7 = vpop.f32.mrb[14].mxu1  ;;  %999 = vmatprep.mubr.bf16.mxu0 %v732_v2 }
 0x1ee   : > { %v651_v8 = vadd.f32 %v650_v7, %v1850_v19  ;;  %v652_v9 = vpop.f32.mrb[15].mxu1  ;;  %1000 = vmatmul.mubr.bf16.gmra.mrb[40].mxu0 %v731_v1  ;;  %v707_v11 = vmax.f32 %v647_v4, 0.0 }
 0x1ef   : > { %v653_v10 = vadd.f32 %v652_v9, %v1853_v20  ;;  %v708_v13 = vmax.f32 %v649_v6, 0.0 }
 0x1f0   : > { %v709_v12 = vmax.f32 %v651_v8, 0.0 }
 0x1f1   : > { %v710_v14 = vmax.f32 %v653_v10, 0.0 }
 0x1f2   : > { %v733_v15 = vpack.c.bf16 %v709_v12, %v707_v11 }
 0x1f3   : > { %v734_v16 = vpack.c.bf16 %v710_v14, %v708_v13  ;;  %v656_v26 = vpop.f32.mrb[16].mxu1  ;;  %v1093_v13 = vld [vmem:[%s1960_s7 + $0x8] sm:$0xff] }
 0x1f4   : > { %v657_v27 = vadd.f32 %v656_v26, %v1850_v19  ;;  %v658_v17 = vpop.f32.mrb[17].mxu1  ;;  %1158 = vmatprep.mubr.f32.mxu1 %v1093_v13 }
 0x1f5   : > { %v659_v18 = vadd.f32 %v658_v17, %v1853_v20  ;;  %v660_v21 = vpop.f32.mrb[18].mxu1  ;;  %1009 = vmatprep.mubr.bf16.mxu0 %v734_v16 }
 0x1f6   : > { %v661_v22 = vadd.f32 %v660_v21, %v1850_v19  ;;  %v662_v24 = vpop.f32.mrb[19].mxu1  ;;  %1010 = vmatmul.mubr.bf16.gmra.mrb[44].mxu0 %v733_v15  ;;  %v711_v29 = vmax.f32 %v657_v27, 0.0 }
 0x1f7   : > { %v663_v28 = vadd.f32 %v662_v24, %v1853_v20  ;;  %v712_v31 = vmax.f32 %v659_v18, 0.0 }
 0x1f8   : > { %v713_v30 = vmax.f32 %v661_v22, 0.0 }
 0x1f9   : > { %v714_v32 = vmax.f32 %v663_v28, 0.0 }
 0x1fa   : > { %v735_v33 = vpack.c.bf16 %v713_v30, %v711_v29 }
 0x1fb   : > { %v736_v34 = vpack.c.bf16 %v714_v32, %v712_v31  ;;  %v666_v35 = vpop.f32.mrb[20].mxu1 }
 0x1fc   : > { %v667_v36 = vadd.f32 %v666_v35, %v1850_v19  ;;  %v668_v37 = vpop.f32.mrb[21].mxu1 }
 0x1fd   : > { %v669_v38 = vadd.f32 %v668_v37, %v1853_v20  ;;  %v670_v39 = vpop.f32.mrb[22].mxu1  ;;  %1019 = vmatprep.mubr.bf16.mxu0 %v736_v34 }
 0x1fe   : > { %v671_v40 = vadd.f32 %v670_v39, %v1850_v19  ;;  %v672_v41 = vpop.f32.mrb[23].mxu1  ;;  %1020 = vmatmul.mubr.bf16.gmra.mrb[48].mxu0 %v735_v33  ;;  %v715_v43 = vmax.f32 %v667_v36, 0.0 }
 0x1ff   : > { %v673_v42 = vadd.f32 %v672_v41, %v1853_v20  ;;  %v716_v45 = vmax.f32 %v669_v38, 0.0 }
 0x200   : > { %v717_v44 = vmax.f32 %v671_v40, 0.0 }
 0x201   : > { %v718_v46 = vmax.f32 %v673_v42, 0.0 }
 0x202   : > { %v737_v47 = vpack.c.bf16 %v717_v44, %v715_v43 }
 0x203   : > { %v738_v48 = vpack.c.bf16 %v718_v46, %v716_v45  ;;  %v676_v49 = vpop.f32.mrb[24].mxu1 }
 0x204   : > { %v677_v50 = vadd.f32 %v676_v49, %v1850_v19  ;;  %v678_v51 = vpop.f32.mrb[25].mxu1 }
 0x205   : > { %v679_v52 = vadd.f32 %v678_v51, %v1853_v20  ;;  %v680_v53 = vpop.f32.mrb[26].mxu1  ;;  %1029 = vmatprep.mubr.bf16.mxu0 %v738_v48 }
 0x206   : > { %v681_v54 = vadd.f32 %v680_v53, %v1850_v19  ;;  %v682_v55 = vpop.f32.mrb[27].mxu1  ;;  %1030 = vmatmul.mubr.bf16.gmra.mrb[52].mxu0 %v737_v47  ;;  %v719_v57 = vmax.f32 %v677_v50, 0.0 }
 0x207   : > { %v683_v56 = vadd.f32 %v682_v55, %v1853_v20  ;;  %v720_v59 = vmax.f32 %v679_v52, 0.0 }
 0x208   : > { %v721_v58 = vmax.f32 %v681_v54, 0.0 }
 0x209   : > { %v722_v60 = vmax.f32 %v683_v56, 0.0 }
 0x20a   : > { %v739_v61 = vpack.c.bf16 %v721_v58, %v719_v57 }
 0x20b   : > { %v740_v62 = vpack.c.bf16 %v722_v60, %v720_v59  ;;  %v686_v63 = vpop.f32.mrb[28].mxu1 }
 0x20c   : > { %v687_v0 = vadd.f32 %v686_v63, %v1850_v19  ;;  %v688_v1 = vpop.f32.mrb[29].mxu1 }
 0x20d   : > { %v689_v2 = vadd.f32 %v688_v1, %v1853_v20  ;;  %v690_v3 = vpop.f32.mrb[30].mxu1  ;;  %1039 = vmatprep.mubr.bf16.mxu0 %v740_v62 }
 0x20e   : > { %v691_v4 = vadd.f32 %v690_v3, %v1850_v19  ;;  %v692_v5 = vpop.f32.mrb[31].mxu1  ;;  %1040 = vmatmul.mubr.bf16.gmra.mrb[56].mxu0 %v739_v61  ;;  %v723_v7 = vmax.f32 %v687_v0, 0.0  ;;  %v775_v19 = vld [vmem:[%s1959_s6] sm:$0x3] }
 0x20f   : > { %v693_v6 = vadd.f32 %v692_v5, %v1853_v20  ;;  %v724_v9 = vmax.f32 %v689_v2, 0.0  ;;  %v1894_v14 = vrot.slane %v775_v19, %v1789_v23  ;;  %v1897_v20 = vrot.slane %v775_v19, %v1794_v25 }
 0x210   : > { %v725_v8 = vmax.f32 %v691_v4, 0.0 }
 0x211   : > { %v726_v10 = vmax.f32 %v693_v6, 0.0 }
 0x212   : > { %v741_v11 = vpack.c.bf16 %v725_v8, %v723_v7 }
 0x213   : > { %v742_v12 = vpack.c.bf16 %v726_v10, %v724_v9 }
 0x215   : > { %1049 = vmatprep.mubr.bf16.mxu0 %v742_v12 }
 0x216   : > { %1050 = vmatmul.mubr.bf16.gmra.mrb[60].mxu0 %v741_v11 }
 0x2b1   : > { %v981_v15 = vpop.f32.mrb[32].mxu0 }
 0x2b2   : > { %v982_v16 = vadd.f32 %v981_v15, %v1894_v14  ;;  %v983_v26 = vpop.f32.mrb[33].mxu0 }
 0x2b3   : > { %v984_v27 = vadd.f32 %v983_v26, %v1897_v20  ;;  %v985_v17 = vpop.f32.mrb[34].mxu0 }
 0x2b4   : > { %v986_v18 = vadd.f32 %v985_v17, %v1894_v14  ;;  %v987_v21 = vpop.f32.mrb[35].mxu0  ;;  %v1060_v24 = vmax.f32 %v982_v16, 0.0 }
 0x2b5   : > { %v988_v22 = vadd.f32 %v987_v21, %v1897_v20  ;;  %v1061_v29 = vmax.f32 %v984_v27, 0.0 }
 0x2b6   : > { %v1062_v28 = vmax.f32 %v986_v18, 0.0 }
 0x2b7   : > { %v1063_v23 = vmax.f32 %v988_v22, 0.0 }
 0x2b8   : > { %v1282_v30 = vpack.c.bf16 %v1062_v28, %v1060_v24 }
 0x2b9   : > { %v1280_v31 = vpack.c.bf16 %v1063_v23, %v1061_v29  ;;  %v991_v25 = vpop.f32.mrb[36].mxu0 }
 0x2ba   : > { %v992_v32 = vadd.f32 %v991_v25, %v1894_v14  ;;  %v993_v33 = vpop.f32.mrb[37].mxu0 }
 0x2bb   : > { %v994_v34 = vadd.f32 %v993_v33, %v1897_v20  ;;  %v995_v35 = vpop.f32.mrb[38].mxu0  ;;  %1281 = vmatprep.subr.bf16.mxu1 %v1280_v31 }
 0x2bc   : > { %v996_v36 = vadd.f32 %v995_v35, %v1894_v14  ;;  %v997_v37 = vpop.f32.mrb[39].mxu0  ;;  %1283 = vmatpush1.bf16.xpose.msra.mxu1 %v1282_v30  ;;  %v1064_v39 = vmax.f32 %v992_v32, 0.0 }
 0x2bd   : > { %v998_v38 = vadd.f32 %v997_v37, %v1897_v20  ;;  %v1065_v41 = vmax.f32 %v994_v34, 0.0 }
 0x2be   : > { %v1066_v40 = vmax.f32 %v996_v36, 0.0 }
 0x2bf   : > { %v1067_v42 = vmax.f32 %v998_v38, 0.0 }
 0x2c0   : > { %v1286_v43 = vpack.c.bf16 %v1066_v40, %v1064_v39 }
 0x2c1   : > { %v1284_v44 = vpack.c.bf16 %v1067_v42, %v1065_v41  ;;  %v1001_v45 = vpop.f32.mrb[40].mxu0 }
 0x2c2   : > { %v1002_v46 = vadd.f32 %v1001_v45, %v1894_v14  ;;  %v1003_v47 = vpop.f32.mrb[41].mxu0 }
 0x2c3   : > { %v1004_v48 = vadd.f32 %v1003_v47, %v1897_v20  ;;  %v1005_v49 = vpop.f32.mrb[42].mxu0  ;;  %1285 = vmatprep.subr.bf16.mxu1 %v1284_v44 }
 0x2c4   : > { %v1006_v50 = vadd.f32 %v1005_v49, %v1894_v14  ;;  %v1007_v51 = vpop.f32.mrb[43].mxu0  ;;  %1287 = vmatpush1.bf16.xpose.msra.mxu1 %v1286_v43  ;;  %v1068_v53 = vmax.f32 %v1002_v46, 0.0 }
 0x2c5   : > { %v1008_v52 = vadd.f32 %v1007_v51, %v1897_v20  ;;  %v1069_v55 = vmax.f32 %v1004_v48, 0.0 }
 0x2c6   : > { %v1070_v54 = vmax.f32 %v1006_v50, 0.0 }
 0x2c7   : > { %v1071_v56 = vmax.f32 %v1008_v52, 0.0 }
 0x2c8   : > { %v1290_v57 = vpack.c.bf16 %v1070_v54, %v1068_v53 }
 0x2c9   : > { %v1288_v58 = vpack.c.bf16 %v1071_v56, %v1069_v55  ;;  %v1011_v59 = vpop.f32.mrb[44].mxu0 }
 0x2ca   : > { %v1012_v60 = vadd.f32 %v1011_v59, %v1894_v14  ;;  %v1013_v61 = vpop.f32.mrb[45].mxu0 }
 0x2cb   : > { %v1014_v62 = vadd.f32 %v1013_v61, %v1897_v20  ;;  %v1015_v63 = vpop.f32.mrb[46].mxu0  ;;  %1289 = vmatprep.subr.bf16.mxu1 %v1288_v58 }
 0x2cc   : > { %v1016_v0 = vadd.f32 %v1015_v63, %v1894_v14  ;;  %v1017_v1 = vpop.f32.mrb[47].mxu0  ;;  %1291 = vmatpush1.bf16.xpose.msra.mxu1 %v1290_v57  ;;  %v1072_v3 = vmax.f32 %v1012_v60, 0.0 }
 0x2cd   : > { %v1018_v2 = vadd.f32 %v1017_v1, %v1897_v20  ;;  %v1073_v5 = vmax.f32 %v1014_v62, 0.0 }
 0x2ce   : > { %v1074_v4 = vmax.f32 %v1016_v0, 0.0 }
 0x2cf   : > { %v1075_v6 = vmax.f32 %v1018_v2, 0.0 }
 0x2d0   : > { %v1294_v7 = vpack.c.bf16 %v1074_v4, %v1072_v3  ;;  %v1092_v3 = vld [vmem:[%s1960_s7] sm:$0xff] }
 0x2d1   : > { %v1292_v8 = vpack.c.bf16 %v1075_v6, %v1073_v5  ;;  %v1021_v9 = vpop.f32.mrb[48].mxu0 }
 0x2d2   : > { %v1022_v10 = vadd.f32 %v1021_v9, %v1894_v14  ;;  %v1023_v11 = vpop.f32.mrb[49].mxu0 }
 0x2d3   : > { %v1024_v12 = vadd.f32 %v1023_v11, %v1897_v20  ;;  %v1025_v13 = vpop.f32.mrb[50].mxu0  ;;  %1293 = vmatprep.subr.bf16.mxu1 %v1292_v8 }
 0x2d4   : > { %v1026_v19 = vadd.f32 %v1025_v13, %v1894_v14  ;;  %v1027_v15 = vpop.f32.mrb[51].mxu0  ;;  %1295 = vmatpush1.bf16.xpose.msra.mxu1 %v1294_v7  ;;  %v1076_v26 = vmax.f32 %v1022_v10, 0.0 }
 0x2d5   : > { %v1028_v16 = vadd.f32 %v1027_v15, %v1897_v20  ;;  %v1077_v17 = vmax.f32 %v1024_v12, 0.0 }
 0x2d6   : > { %v1078_v27 = vmax.f32 %v1026_v19, 0.0 }
 0x2d7   : > { %v1079_v18 = vmax.f32 %v1028_v16, 0.0 }
 0x2d8   : > { %v1298_v21 = vpack.c.bf16 %v1078_v27, %v1076_v26 }
 0x2d9   : > { %v1296_v22 = vpack.c.bf16 %v1079_v18, %v1077_v17  ;;  %v1031_v24 = vpop.f32.mrb[52].mxu0 }
 0x2da   : > { %v1032_v28 = vadd.f32 %v1031_v24, %v1894_v14  ;;  %v1033_v29 = vpop.f32.mrb[53].mxu0 }
 0x2db   : > { %v1034_v23 = vadd.f32 %v1033_v29, %v1897_v20  ;;  %v1035_v30 = vpop.f32.mrb[54].mxu0  ;;  %1297 = vmatprep.subr.bf16.mxu1 %v1296_v22 }
 0x2dc   : > { %v1036_v31 = vadd.f32 %v1035_v30, %v1894_v14  ;;  %v1037_v25 = vpop.f32.mrb[55].mxu0  ;;  %1299 = vmatpush1.bf16.xpose.msra.mxu1 %v1298_v21  ;;  %v1080_v33 = vmax.f32 %v1032_v28, 0.0 }
 0x2dd   : > { %v1038_v32 = vadd.f32 %v1037_v25, %v1897_v20  ;;  %v1081_v35 = vmax.f32 %v1034_v23, 0.0 }
 0x2de   : > { %v1082_v34 = vmax.f32 %v1036_v31, 0.0 }
 0x2df   : > { %v1083_v36 = vmax.f32 %v1038_v32, 0.0 }
 0x2e0   : > { %v1302_v37 = vpack.c.bf16 %v1082_v34, %v1080_v33 }
 0x2e1   : > { %v1300_v38 = vpack.c.bf16 %v1083_v36, %v1081_v35  ;;  %v1041_v39 = vpop.f32.mrb[56].mxu0 }
 0x2e2   : > { %v1042_v40 = vadd.f32 %v1041_v39, %v1894_v14  ;;  %v1043_v41 = vpop.f32.mrb[57].mxu0 }
 0x2e3   : > { %v1044_v42 = vadd.f32 %v1043_v41, %v1897_v20  ;;  %v1045_v43 = vpop.f32.mrb[58].mxu0  ;;  %1301 = vmatprep.subr.bf16.mxu1 %v1300_v38 }
 0x2e4   : > { %v1046_v44 = vadd.f32 %v1045_v43, %v1894_v14  ;;  %v1047_v45 = vpop.f32.mrb[59].mxu0  ;;  %1303 = vmatpush1.bf16.xpose.msra.mxu1 %v1302_v37  ;;  %v1084_v47 = vmax.f32 %v1042_v40, 0.0 }
 0x2e5   : > { %v1048_v46 = vadd.f32 %v1047_v45, %v1897_v20  ;;  %v1085_v49 = vmax.f32 %v1044_v42, 0.0 }
 0x2e6   : > { %v1086_v48 = vmax.f32 %v1046_v44, 0.0 }
 0x2e7   : > { %v1087_v50 = vmax.f32 %v1048_v46, 0.0 }
 0x2e8   : > { %v1306_v51 = vpack.c.bf16 %v1086_v48, %v1084_v47 }
 0x2e9   : > { %v1304_v52 = vpack.c.bf16 %v1087_v50, %v1085_v49  ;;  %v1051_v53 = vpop.f32.mrb[60].mxu0 }
 0x2ea   : > { %v1052_v54 = vadd.f32 %v1051_v53, %v1894_v14  ;;  %v1053_v55 = vpop.f32.mrb[61].mxu0 }
 0x2eb   : > { %v1054_v56 = vadd.f32 %v1053_v55, %v1897_v20  ;;  %v1055_v57 = vpop.f32.mrb[62].mxu0  ;;  %1305 = vmatprep.subr.bf16.mxu1 %v1304_v52 }
 0x2ec   : > { %v1056_v58 = vadd.f32 %v1055_v57, %v1894_v14  ;;  %v1057_v59 = vpop.f32.mrb[63].mxu0  ;;  %1307 = vmatpush1.bf16.xpose.msra.mxu1 %v1306_v51  ;;  %v1088_v61 = vmax.f32 %v1052_v54, 0.0  ;;  %v1164_v14 = vld [vmem:[%s1961_s8] sm:$0x1] }
 0x2ed   : > { %v1058_v60 = vadd.f32 %v1057_v59, %v1897_v20  ;;  %v1089_v63 = vmax.f32 %v1054_v56, 0.0 }
 0x2ee   : > { %v1090_v62 = vmax.f32 %v1056_v58, 0.0 }
 0x2ef   : > { %v1091_v0 = vmax.f32 %v1058_v60, 0.0 }
 0x2f0   : > { %v1310_v1 = vpack.c.bf16 %v1090_v62, %v1088_v61 }
 0x2f1   : > { %v1308_v2 = vpack.c.bf16 %v1091_v0, %v1089_v63 }
 0x2f3   : > { %1309 = vmatprep.subr.bf16.mxu1 %v1308_v2 }
 0x2f4   : > { %1311 = vmatpush1.bf16.xpose.msra.mxu1 %v1310_v1 }
 0x2fb   : > { %1159 = vmatmul.mubr.f32.vlgmr.msra.gmra.mrb[32].mxu1 %v1092_v3 }
 0x3cb   :  { %38 = sbr.rel (!%p36_p0) target bundleno = 1 (0x1), region = 65 }
 0x3ce   : > { %v1160_v4 = vpop.f32.mrb[32].mxu1 }
 0x3cf   : > { %v1165_v5 = vadd.f32 %v1164_v14, %v1160_v4  ;;  %v1162_v20 = vpop.f32.mrb[33].mxu1 }
 0x3d1   : > { %1167 = vst [vmem:[%s1166_s12] sm:$0x1] %v1165_v5 }
 0x3d2   :  { %1461 = shalt.err (!%p1458_p5)
}
 0x3d3   :  { %s1462_s17 = scalar_lea.hbm %s1962_s9, 128 }
 0x3d4   :  { %p1463_p6 = scmp.ne.s32.totalorder %s1962_s9, %s1462_s17  ;;  %p1466_p7 = scmp.lt.u32.totalorder %s1462_s17, %s1962_s9 }
 0x3d6   :  { %p1468_p8 = pnand %p1466_p7, %p1463_p6 }
 0x3d8   :  { %1471 = shalt.err (!%p1468_p8)
}
 0x3d9   :  { %1177 = dma.vmem_to_hbm [thread:$0]  %s1175_s29, 128, %s1962_s9, [#allocation3]  }
 0x3da   :  { %1476 = dma.done.wait [#allocation3], 128  }
 0x3db   :  { %1477 = vsyncadd [#allocation3], 4294967168 }
 0x3dc   :  { %1181 = vsyncpa [#allocation3], 1 }

</bundles_post_ra>
